<compile_context>
chip_gen: v7x
topology: tpu7x:2x2x1
jax: 0.10.0
libtpu: 0.0.40
codegen_flags: <defaults>
</compile_context>

<pallas_src>
import functools

import jax
import jax.numpy as jnp
from jax.experimental import pallas as pl
from jax.experimental.pallas import tpu as pltpu


def bahdanau_kernel(q_ref, pk_ref, v_ref, len_ref, wqt_ref, we_ref,
                    ctx_ref, alpha_ref):
    q = q_ref[...].astype(jnp.float32)        # [TB, Q]
    pk = pk_ref[...].astype(jnp.float32)      # [TB, S, H]
    v = v_ref[...].astype(jnp.float32)        # [TB, S, V]
    lens = len_ref[...]                       # [TB, 1] int32
    wqt = wqt_ref[...].astype(jnp.float32)    # [Q, H]  (pre-transposed Wq)
    we = we_ref[...].astype(jnp.float32)      # [1, H]

    # query_layer over the whole batch block: single MXU matmul [TB,Q]@[Q,H].
    qp = jnp.dot(q, wqt, preferred_element_type=jnp.float32)    # [TB, H]

    # energy_layer(tanh(q + proj_key)) without materializing e.T:
    # VPU multiply + lane reduce over H (XLU slot, free vs VALU).
    e = jnp.tanh(qp[:, None, :] + pk)                           # [TB, S, H]
    scores = jnp.sum(e * we[None, :, :], axis=-1)               # [TB, S]

    # masked_fill(mask == 0, -inf): mask rebuilt in-kernel from lengths.
    col = jax.lax.broadcasted_iota(jnp.int32, scores.shape, 1)  # [TB, S]
    scores = jnp.where(col < lens, scores, -jnp.inf)

    # softmax along S (f32 throughout).
    m = jnp.max(scores, axis=-1, keepdims=True)
    p = jnp.exp(scores - m)
    denom = jnp.sum(p, axis=-1, keepdims=True)
    r = pl.reciprocal(denom, approx=True)      # EUP slot (otherwise idle)
    r = r * (2.0 - denom * r)                  # one Newton step -> ~f32 accuracy
    alphas = p * r                                              # [TB, S]

    # context = bmm(alphas, value) as a VPU weighted sum over S (M == 1).
    ctx = jnp.sum(alphas[:, :, None] * v, axis=1)               # [TB, V]

    ctx_ref[...] = ctx.astype(ctx_ref.dtype)
    alpha_ref[...] = alphas.astype(alpha_ref.dtype)


def _pick_tb(B, S, H, V, Q, vmem_budget_bytes=8 << 20):
    """Largest batch tile (multiple of 8) whose double-buffered working set
    stays under the budget."""
    per_row = 4 * (S * H + S * V + Q + V + S + 1)   # f32 bytes per batch row
    tb = vmem_budget_bytes // max(1, 2 * per_row)   # x2: double buffering
    tb = (tb // 8) * 8
    tb = max(8, min(tb, 1024))
    b_pad = ((B + 7) // 8) * 8
    return min(tb, b_pad)


@functools.partial(jax.jit, static_argnames=("tb",))
def bahdanau_attention(query, proj_key, value, lengths, wq, we, *, tb=None):
    """query [B,1,Q], proj_key [B,S,H], value [B,S,V], lengths int32[B],
    wq = query_layer.weight [H,Q], we = energy_layer.weight [1,H].
    Returns (context [B,1,V], alphas [B,1,S])."""
    B, M, Q = query.shape
    _, S, H = proj_key.shape
    V = value.shape[-1]
    assert M == 1, "single decoder step (M=1) expected"

    if tb is None:
        tb = _pick_tb(B, S, H, V, Q)

    # Pad batch up to a multiple of the batch tile.
    nb = pl.cdiv(B, tb)
    B_pad = nb * tb
    pad = B_pad - B

    q2d = query.reshape(B, Q)
    lens = lengths.astype(jnp.int32).reshape(B, 1)
    if pad:
        q2d = jnp.pad(q2d, ((0, pad), (0, 0)))
        proj_key = jnp.pad(proj_key, ((0, pad), (0, 0), (0, 0)))
        value = jnp.pad(value, ((0, pad), (0, 0), (0, 0)))
        # Padded rows get full length so they don't produce NaN softmax rows.
        lens = jnp.pad(lens, ((0, pad), (0, 0)), constant_values=S)

    wq_t = wq.T  # [Q, H]: transpose once in the wrapper, not per grid step.

    grid_spec = pltpu.PrefetchScalarGridSpec(
        num_scalar_prefetch=0,
        grid=(nb,),
        in_specs=[
            pl.BlockSpec((tb, Q), lambda b: (b, 0)),        # query (squeezed)
            pl.BlockSpec((tb, S, H), lambda b: (b, 0, 0)),  # proj_key
            pl.BlockSpec((tb, S, V), lambda b: (b, 0, 0)),  # value
            pl.BlockSpec((tb, 1), lambda b: (b, 0)),        # lengths
            pl.BlockSpec((Q, H), lambda b: (0, 0)),         # Wq^T (resident)
            pl.BlockSpec((1, H), lambda b: (0, 0)),         # We   (resident)
        ],
        out_specs=[
            pl.BlockSpec((tb, V), lambda b: (b, 0)),        # context (lane-dense)
            pl.BlockSpec((tb, S), lambda b: (b, 0)),        # alphas  (lane-dense)
        ],
    )

    flops = 2 * B_pad * (Q * H + 2 * S * H + 2 * S * V)
    transcendentals = B_pad * S * (H + 1)
    bytes_accessed = 4 * (B_pad * (Q + S * H + S * V + 1 + V + S) + Q * H + H)

    ctx, alphas = pl.pallas_call(
        bahdanau_kernel,
        out_shape=(
            jax.ShapeDtypeStruct((B_pad, V), jnp.float32),
            jax.ShapeDtypeStruct((B_pad, S), jnp.float32),
        ),
        grid_spec=grid_spec,
        compiler_params=pltpu.CompilerParams(
            dimension_semantics=("parallel",)),
        cost_estimate=pl.CostEstimate(
            flops=flops,
            transcendentals=transcendentals,
            bytes_accessed=bytes_accessed),
    )(q2d, proj_key, value, lens, wq_t, we)

    return ctx[:B].reshape(B, 1, V), alphas[:B].reshape(B, 1, S)


def ref_forward(query, proj_key, value, mask, wq, we):
    # Pure-JAX reference mirroring the PyTorch forward.
    q = query @ wq.T                                   # [B,1,H]
    scores = jnp.tanh(q + proj_key) @ we.T             # [B,S,1]
    scores = jnp.swapaxes(scores, 1, 2)                # [B,1,S]
    scores = jnp.where(mask == 0, -jnp.inf, scores)
    alphas = jax.nn.softmax(scores, axis=-1)
    context = jnp.einsum('bms,bsv->bmv', alphas, value)
    return context, alphas


if __name__ == "__main__":
    B, S, H = 2, 8, 32
    key_size = 2 * H        # 64
    query_size = H          # 32
    V = key_size            # value dim = 2*hidden

    key = jax.random.PRNGKey(0)
    k1, k2, k3, k4, k5, k6 = jax.random.split(key, 6)

    # Parameter shapes per nn.Linear(..., bias=False).
    # key_layer.weight [H, key_size] is unused in forward (proj_key precomputed).
    wk = jax.random.uniform(k1, (H, key_size), jnp.float32, -0.1, 0.1)  # unused
    wq = jax.random.uniform(k2, (H, query_size), jnp.float32, -0.1, 0.1)
    we = jax.random.uniform(k3, (1, H), jnp.float32, -0.1, 0.1)

    query = jax.random.normal(k4, (B, 1, query_size), jnp.float32)
    proj_key = jax.random.normal(k5, (B, S, H), jnp.float32)
    value = jax.random.normal(k6, (B, S, V), jnp.float32)

    lengths = jnp.array([S, 5], dtype=jnp.int32)
    mask = (jnp.arange(S)[None, None, :] < lengths[:, None, None]).astype(jnp.int32)

    context, alphas = bahdanau_attention(query, proj_key, value, lengths, wq, we)
    jax.block_until_ready((context, alphas))

    ctx_ref, al_ref = ref_forward(query, proj_key, value, mask, wq, we)
    assert context.shape == (B, 1, V) and alphas.shape == (B, 1, S)
    assert jnp.allclose(alphas, al_ref, atol=1e-5), "alphas mismatch"
    assert jnp.allclose(context, ctx_ref, atol=1e-5), "context mismatch"

    print("KERNEL_OK")
</pallas_src>

<mosaic_0001>
module attributes {stable_mosaic.version = 11 : i64} {
  func.func @bahdanau_kernel(%arg0: i32, %arg1: memref<8x32xf32, #tpu.memory_space<vmem>>, %arg2: memref<8x8x32xf32, #tpu.memory_space<vmem>>, %arg3: memref<8x8x64xf32, #tpu.memory_space<vmem>>, %arg4: memref<8x1xi32, #tpu.memory_space<vmem>>, %arg5: memref<32x32xf32, #tpu.memory_space<vmem>>, %arg6: memref<1x32xf32, #tpu.memory_space<vmem>>, %arg7: memref<8x64xf32, #tpu.memory_space<vmem>>, %arg8: memref<8x8xf32, #tpu.memory_space<vmem>>) attributes {dimension_semantics = [#tpu.dimension_semantics<parallel>], iteration_bounds = array<i64: 1>, scalar_prefetch = 0 : i64, scratch_operands = 0 : i64, tpu.core_type = #tpu.core_type<tc>, window_params = [{transform_indices = @transform_0, window_bounds = array<i64: 8, 32>}, {transform_indices = @transform_1, window_bounds = array<i64: 8, 8, 32>}, {transform_indices = @transform_2, window_bounds = array<i64: 8, 8, 64>}, {transform_indices = @transform_3, window_bounds = array<i64: 8, 1>}, {pipeline_mode = #tpu.pipeline_mode<synchronous>, transform_indices = @transform_4, window_bounds = array<i64: 32, 32>}, {pipeline_mode = #tpu.pipeline_mode<synchronous>, transform_indices = @transform_5, window_bounds = array<i64: 1, 32>}, {transform_indices = @transform_6, window_bounds = array<i64: 8, 64>}, {transform_indices = @transform_7, window_bounds = array<i64: 8, 8>}]} {
    %c0 = arith.constant 0 : index
    %c0_0 = arith.constant 0 : index
    %0 = vector.load %arg1[%c0, %c0_0] : memref<8x32xf32, #tpu.memory_space<vmem>>, vector<8x32xf32>
    %c0_1 = arith.constant 0 : index
    %c0_2 = arith.constant 0 : index
    %c0_3 = arith.constant 0 : index
    %1 = vector.load %arg2[%c0_1, %c0_2, %c0_3] : memref<8x8x32xf32, #tpu.memory_space<vmem>>, vector<8x8x32xf32>
    %c0_4 = arith.constant 0 : index
    %c0_5 = arith.constant 0 : index
    %c0_6 = arith.constant 0 : index
    %2 = vector.load %arg3[%c0_4, %c0_5, %c0_6] : memref<8x8x64xf32, #tpu.memory_space<vmem>>, vector<8x8x64xf32>
    %c0_7 = arith.constant 0 : index
    %c0_8 = arith.constant 0 : index
    %3 = vector.load %arg4[%c0_7, %c0_8] : memref<8x1xi32, #tpu.memory_space<vmem>>, vector<8x1xi32>
    %c0_9 = arith.constant 0 : index
    %c0_10 = arith.constant 0 : index
    %4 = vector.load %arg5[%c0_9, %c0_10] : memref<32x32xf32, #tpu.memory_space<vmem>>, vector<32x32xf32>
    %c0_11 = arith.constant 0 : index
    %c0_12 = arith.constant 0 : index
    %5 = vector.load %arg6[%c0_11, %c0_12] : memref<1x32xf32, #tpu.memory_space<vmem>>, vector<1x32xf32>
    %cst = arith.constant dense<0.000000e+00> : vector<8x32xf32>
    %6 = tpu.matmul %0, %4, %cst {dimension_numbers = #tpu.dot_dimension_numbers<[1], [0], [0], [1], [0, 0, 1, 1], [], []>} : vector<8x32xf32>, vector<32x32xf32>, vector<8x32xf32> -> vector<8x32xf32>
    %7 = vector.shape_cast %6 : vector<8x32xf32> to vector<8x1x32xf32>
    %8 = vector.broadcast %7 : vector<8x1x32xf32> to vector<8x8x32xf32>
    %9 = arith.addf %8, %1 : vector<8x8x32xf32>
    %10 = math.tanh %9 : vector<8x8x32xf32>
    %11 = vector.shape_cast %5 : vector<1x32xf32> to vector<1x1x32xf32>
    %12 = vector.broadcast %11 : vector<1x1x32xf32> to vector<8x8x32xf32>
    %13 = arith.mulf %10, %12 : vector<8x8x32xf32>
    %cst_13 = arith.constant dense<0.000000e+00> : vector<8x8xf32>
    %14 = vector.multi_reduction <add>, %13, %cst_13 [2] : vector<8x8x32xf32> to vector<8x8xf32>
    %15 = tpu.iota {dimensions = array<i32: 1>} : vector<8x8xi32>
    %16 = vector.broadcast %3 : vector<8x1xi32> to vector<8x8xi32>
    %17 = arith.cmpi slt, %15, %16 : vector<8x8xi32>
    %cst_14 = arith.constant 0xFF800000 : f32
    %18 = vector.broadcast %cst_14 : f32 to vector<8x8xf32>
    %19 = arith.select %17, %14, %18 : vector<8x8xi1>, vector<8x8xf32>
    %cst_15 = arith.constant dense<0xFF800000> : vector<8xf32>
    %20 = vector.multi_reduction <maximumf>, %19, %cst_15 [1] : vector<8x8xf32> to vector<8xf32>
    %21 = vector.shape_cast %20 : vector<8xf32> to vector<8x1xf32>
    %22 = vector.broadcast %21 : vector<8x1xf32> to vector<8x8xf32>
    %23 = arith.subf %19, %22 : vector<8x8xf32>
    %24 = math.exp %23 : vector<8x8xf32>
    %cst_16 = arith.constant dense<0.000000e+00> : vector<8xf32>
    %25 = vector.multi_reduction <add>, %24, %cst_16 [1] : vector<8x8xf32> to vector<8xf32>
    %26 = vector.shape_cast %25 : vector<8xf32> to vector<8x1xf32>
    %27 = tpu.reciprocal %26 {approx = true} : vector<8x1xf32> -> vector<8x1xf32>
    %28 = arith.mulf %26, %27 : vector<8x1xf32>
    %cst_17 = arith.constant 2.000000e+00 : f32
    %29 = vector.broadcast %cst_17 : f32 to vector<8x1xf32>
    %30 = arith.subf %29, %28 : vector<8x1xf32>
    %31 = arith.mulf %27, %30 : vector<8x1xf32>
    %32 = vector.broadcast %31 : vector<8x1xf32> to vector<8x8xf32>
    %33 = arith.mulf %24, %32 : vector<8x8xf32>
    %34 = vector.shape_cast %33 : vector<8x8xf32> to vector<8x8x1xf32>
    %35 = vector.broadcast %34 : vector<8x8x1xf32> to vector<8x8x64xf32>
    %36 = arith.mulf %35, %2 : vector<8x8x64xf32>
    %cst_18 = arith.constant dense<0.000000e+00> : vector<8x64xf32>
    %37 = vector.multi_reduction <add>, %36, %cst_18 [1] : vector<8x8x64xf32> to vector<8x64xf32>
    %c0_19 = arith.constant 0 : index
    %c0_20 = arith.constant 0 : index
    %38 = vector.load %arg7[%c0_19, %c0_20] : memref<8x64xf32, #tpu.memory_space<vmem>>, vector<8x64xf32>
    tpu.vector_store %arg7[%c0_19, %c0_20], %37 {strides = array<i32>} : memref<8x64xf32, #tpu.memory_space<vmem>>, vector<8x64xf32>,
    %c0_21 = arith.constant 0 : index
    %c0_22 = arith.constant 0 : index
    %39 = vector.load %arg8[%c0_21, %c0_22] : memref<8x8xf32, #tpu.memory_space<vmem>>, vector<8x8xf32>
    tpu.vector_store %arg8[%c0_21, %c0_22], %33 {strides = array<i32>} : memref<8x8xf32, #tpu.memory_space<vmem>>, vector<8x8xf32>,
    return
  }
  func.func @transform_0(%arg0: i32) -> (i32, i32) {
    %c0_i32 = arith.constant 0 : i32
    %c0_i32_0 = arith.constant 0 : i32
    return %arg0, %c0_i32 : i32, i32
  }
  func.func @transform_1(%arg0: i32) -> (i32, i32, i32) {
    %c0_i32 = arith.constant 0 : i32
    %c0_i32_0 = arith.constant 0 : i32
    %c0_i32_1 = arith.constant 0 : i32
    return %arg0, %c0_i32, %c0_i32_0 : i32, i32, i32
  }
  func.func @transform_2(%arg0: i32) -> (i32, i32, i32) {
    %c0_i32 = arith.constant 0 : i32
    %c0_i32_0 = arith.constant 0 : i32
    %c0_i32_1 = arith.constant 0 : i32
    return %arg0, %c0_i32, %c0_i32_0 : i32, i32, i32
  }
  func.func @transform_3(%arg0: i32) -> (i32, i32) {
    %c0_i32 = arith.constant 0 : i32
    %c0_i32_0 = arith.constant 0 : i32
    return %arg0, %c0_i32 : i32, i32
  }
  func.func @transform_4(%arg0: i32) -> (i32, i32) {
    %c0_i32 = arith.constant 0 : i32
    %c0_i32_0 = arith.constant 0 : i32
    %c0_i32_1 = arith.constant 0 : i32
    return %c0_i32, %c0_i32_0 : i32, i32
  }
  func.func @transform_5(%arg0: i32) -> (i32, i32) {
    %c0_i32 = arith.constant 0 : i32
    %c0_i32_0 = arith.constant 0 : i32
    %c0_i32_1 = arith.constant 0 : i32
    return %c0_i32, %c0_i32_0 : i32, i32
  }
  func.func @transform_6(%arg0: i32) -> (i32, i32) {
    %c0_i32 = arith.constant 0 : i32
    %c0_i32_0 = arith.constant 0 : i32
    return %arg0, %c0_i32 : i32, i32
  }
  func.func @transform_7(%arg0: i32) -> (i32, i32) {
    %c0_i32 = arith.constant 0 : i32
    %c0_i32_0 = arith.constant 0 : i32
    return %arg0, %c0_i32 : i32, i32
  }
}

</mosaic_0001>

<bundles_post_ra>
// kernel: bahdanau_attention.1
= control target key start
LH: loop header
LB: loop body
LE: loop exit
PB: predicated region body
PF: predicated region fallthrough
CT: control target
= control target key end

     0   :  { %v540_v0 = vmov 0.0|0.0   ;;  %vm541_vm0 = vmmov 0   ;;  %v542_v4 = vmov 0.0   ;;  %vm48_vm1 = vcmask 261120   ;;  %s720_s4 = inlined_call_operand.vmem [shape: f32[32,32], index: 4, kind: input, shape index: {}]   ;;  %s721_s0 = inlined_call_operand.vmem [shape: f32[8,32], index: 0, kind: input, shape index: {}]   ;;  %s722_s1 = inlined_call_operand.vmem [shape: f32[8,8,32], index: 1, kind: input, shape index: {}]   ;;  %s723_s5 = inlined_call_operand.vmem [shape: f32[1,32], index: 5, kind: input, shape index: {}]   ;;  %s724_s3 = inlined_call_operand.vmem [shape: s32[8,1], index: 3, kind: input, shape index: {}]   ;;  %s725_s7 = inlined_call_operand.vmem [shape: f32[8,8], index: 7, kind: output, shape index: {1}]   ;;  %s726_s2 = inlined_call_operand.vmem [shape: f32[8,8,64], index: 2, kind: input, shape index: {}]   ;;  %s727_s6 = inlined_call_operand.vmem [shape: f32[8,64], index: 6, kind: output, shape index: {0}]  }
   0x1   :  { %508 = vmatprep.subr.bf16.mxu0 %v540_v0  ;;  %v43_v1 = vld [vmem:[%s720_s4] sm:$0xff]  ;;  %v44_v2 = vld [vmem:[%s720_s4 + $0x8] sm:$0xff]  ;;  %v45_v3 = vld [vmem:[%s720_s4 + $0x10] sm:$0xff]  ;;  %505 = vmatprep.mubr.msk.f32.mxu0 %vm541_vm0, %v542_v4  ;;  %v543_v9 = vmov 0   ;;  %v544_v10 = vmov 1966171168   ;;  %v127_v12 = vlaneseq }
   0x2   :  { %v509_v5 = vpack.c.bf16 %v44_v2, %v43_v1  ;;  %v46_v6 = vld [vmem:[%s720_s4 + $0x18] sm:$0xff]  ;;  %v25_v8 = vld [vmem:[%s721_s0] sm:$0xff]  ;;  %519 = vset.pattern.permute.xlu0 %v543_v9  ;;  %v125_v11 = vunpack.c.l.s4 %v544_v10  ;;  %v27_v30 = vld [vmem:[%s722_s1 + $0x8] sm:$0xff]  ;;  %vm312_vm2 = vcmask 1041409   ;;  %vm314_vm3 = vcmask 1042434  }
   0x3   :  { %v512_v7 = vpack.c.bf16 %v46_v6, %v45_v3  ;;  %v602_v14 = vshrl.u32 %v127_v12, 7  ;;  %v26_v24 = vld [vmem:[%s722_s1] sm:$0xff]  ;;  %v28_v31 = vld [vmem:[%s722_s1 + $0x10] sm:$0xff]  ;;  %v29_v36 = vld [vmem:[%s722_s1 + $0x18] sm:$0xff]  ;;  %vm316_vm4 = vcmask 1043459   ;;  %vm318_vm5 = vcmask 1044484  }
   0x4   :  { %510 = vmatpush3.bf16.msra.mxu0 %v509_v5  ;;  %v126_v13 = vunpack.c.0.s8 %v125_v11  ;;  %v30_v37 = vld [vmem:[%s722_s1 + $0x20] sm:$0xff]  ;;  %v31_v44 = vld [vmem:[%s722_s1 + $0x28] sm:$0xff]  ;;  %v32_v48 = vld [vmem:[%s722_s1 + $0x30] sm:$0xff]  ;;  %vm320_vm6 = vcmask 1045509   ;;  %vm322_vm7 = vcmask 1046534   ;;  %vm324_vm8 = vcmask 1047559  }
   0x5   :  { %511 = vmatprep.subr.bf16.mxu0 %v540_v0  ;;  %v606_v20 = vsub.s32 0, %v602_v14  ;;  %v33_v53 = vld [vmem:[%s722_s1 + $0x38] sm:$0xff]  ;;  %v491_v56 = vld [vmem:[%s723_s5] ss:$0 sm:$0xff]  ;;  %vm328_vm9 = vcmask 64512   ;;  %vm407_vm11 = vcmask 523264  }
   0x6   :  { %v129_v15 = vsub.s32 %v126_v13, %v602_v14 }
   0x8   :  { %513 = vmatpush3.bf16.msra.mxu0 %v512_v7 }
   0xb   :  { %506 = vmatmul.mubr.msk.f32.vlgmr.msra.gmra.mrb[0].mxu0 %vm48_vm1, %v25_v8 }
  0xde   :  { %v118_v16 = vpop.f32.mrb[0].mxu0 }
  0xdf   :  { %v123_v17 = vcombine.high %v118_v16, %v118_v16  ;;  %v130_v18 = vrot.slane %v118_v16, %v129_v15  ;;  %v507_v19 = vpop.f32.mrb[1].mxu0 }
  0xe0   :  { %v42_v19 = vld [vmem:[%s724_s3] sm:$0xff] }
  0xe1   :  { %v137_v21 = vrot.slane %v123_v17, %v129_v15  ;;  %v138_v22 = vcombine.high %v130_v18, %v130_v18  ;;  %v146_v23 = vrot.slane %v130_v18, %v129_v15 }
  0xe3   :  { %v139_v25 = vcombine.high %v137_v21, %v137_v21  ;;  %v153_v26 = vrot.slane %v137_v21, %v129_v15  ;;  %v160_v27 = vrot.slane %v138_v22, %v129_v15  ;;  %v168_v28 = vcombine.high %v146_v23, %v146_v23 }
  0xe4   :  { %v175_v29 = vrot.slane %v146_v23, %v606_v20  ;;  %v267_v21 = vand.u32 127, %v127_v12 }
  0xe5   :  { %v167_v32 = vrot.slane %v139_v25, %v129_v15  ;;  %v169_v33 = vcombine.high %v153_v26, %v153_v26  ;;  %v170_v34 = vcombine.high %v160_v27, %v160_v27  ;;  %v179_v35 = vrot.slane %v160_v27, %v606_v20 }
  0xe6   :  { %v183_v38 = vrot.slane %v168_v28, %v606_v20  ;;  %v191_v39 = vrot.slane %v153_v26, %v606_v20  ;;  %v212_v40 = vadd.f32 %v175_v29, %v26_v24  ;;  %v282_v23 = vsub.s32 %v267_v21, %v602_v14 }
  0xe7   :  { %v171_v41 = vcombine.high %v167_v32, %v167_v32  ;;  %v187_v42 = vrot.slane %v170_v34, %v606_v20  ;;  %v195_v43 = vrot.slane %v167_v32, %v606_v20  ;;  %v199_v45 = vrot.slane %v169_v33, %v606_v20 }
  0xe8   :  { %v213_v46 = vadd.f32 %v179_v35, %v27_v30  ;;  %v214_v47 = vadd.f32 %v183_v38, %v28_v31  ;;  %520 = vtanh.f32 %v212_v40  ;;  %v216_v50 = vadd.f32 %v191_v39, %v30_v37 }
  0xe9   :  { %v215_v49 = vadd.f32 %v187_v42, %v29_v36  ;;  %v203_v51 = vrot.slane %v171_v41, %v606_v20  ;;  %v217_v52 = vadd.f32 %v195_v43, %v31_v44  ;;  %v218_v54 = vadd.f32 %v199_v45, %v32_v48 }
  0xea   :  { %522 = vtanh.f32 %v213_v46 }
  0xeb   :  { %524 = vtanh.f32 %v214_v47  ;;  %v219_v55 = vadd.f32 %v203_v51, %v33_v53 }
  0xec   :  { %526 = vtanh.f32 %v215_v49 }
  0xed   :  { %528 = vtanh.f32 %v216_v50 }
  0xee   :  { %530 = vtanh.f32 %v217_v52 }
  0xef   :  { %532 = vtanh.f32 %v218_v54 }
  0xf0   :  { %534 = vtanh.f32 %v219_v55 }
  0xf2   :  { %v521_v57 = vpop.eup %520 }
  0xf3   :  { %v234_v58 = vmul.f32 %v521_v57, %v491_v56 }
  0xf4   :  { %v523_v59 = vpop.eup %522 }
  0xf5   :  { %v525_v60 = vpop.eup %524  ;;  %v242_v61 = vsel %vm48_vm1, %v234_v58, 0.0  ;;  %v235_v62 = vmul.f32 %v523_v59, %v491_v56  ;;  %v387_v58 = vsub.s32 6, %v602_v14 }
  0xf6   :  { %v527_v63 = vpop.eup %526  ;;  %243 = vadd.xlane.f32.xlu0 %v242_v61  ;;  %v236_v0 = vmul.f32 %v525_v60, %v491_v56 }
  0xf7   :  { %v529_v1 = vpop.eup %528  ;;  %v237_v3 = vmul.f32 %v527_v63, %v491_v56  ;;  %v245_v5 = vsel %vm48_vm1, %v235_v62, 0.0  ;;  %v352_v62 = vsub.s32 1, %v602_v14 }
  0xf8   :  { %v248_v2 = vsel %vm48_vm1, %v236_v0, 0.0  ;;  %v531_v4 = vpop.eup %530  ;;  %v238_v6 = vmul.f32 %v529_v1, %v491_v56  ;;  %v359_v0 = vsub.s32 2, %v602_v14 }
  0xf9   :  { %249 = vadd.xlane.f32.xlu1 %v248_v2  ;;  %v533_v7 = vpop.eup %532  ;;  %v251_v8 = vsel %vm48_vm1, %v237_v3, 0.0  ;;  %v239_v9 = vmul.f32 %v531_v4, %v491_v56  ;;  %v366_v2 = vsub.s32 3, %v602_v14  ;;  %v373_v4 = vsub.s32 4, %v602_v14 }
  0xfa   :  { %246 = vadd.xlane.f32.xlu0 %v245_v5  ;;  %v535_v10 = vpop.eup %534  ;;  %v254_v11 = vsel %vm48_vm1, %v238_v6, 0.0  ;;  %v240_v13 = vmul.f32 %v533_v7, %v491_v56  ;;  %v380_v6 = vsub.s32 5, %v602_v14  ;;  %v394_v7 = vsub.s32 7, %v602_v14  ;;  %v36_v14 = vld [vmem:[%s726_s2 + $0x10] sm:$0xff] }
  0xfb   :  { %v257_v15 = vsel %vm48_vm1, %v239_v9, 0.0  ;;  %v241_v16 = vmul.f32 %v535_v10, %v491_v56  ;;  %v34_v9 = vld [vmem:[%s726_s2] sm:$0xff] }
  0xfc   :  { %v260_v17 = vsel %vm48_vm1, %v240_v13, 0.0 }
  0xfd   :  { %252 = vadd.xlane.f32.xlu1 %v251_v8  ;;  %v263_v18 = vsel %vm48_vm1, %v241_v16, 0.0 }
  0xfe   :  { %255 = vadd.xlane.f32.xlu0 %v254_v11  ;;  %v35_v11 = vld [vmem:[%s726_s2 + $0x8] sm:$0xff] }
 0x101   :  { %258 = vadd.xlane.f32.xlu1 %v257_v15 }
 0x102   :  { %261 = vadd.xlane.f32.xlu0 %v260_v17  ;;  %v40_v17 = vld [vmem:[%s726_s2 + $0x30] sm:$0xff] }
 0x105   :  { %264 = vadd.xlane.f32.xlu1 %v263_v18 }
 0x118   :  { %269 = vperm.xlu0 %519, %v42_v19  }
 0x183   :  { %v244_v22 = vpop.xlane.xlu0 %243 }
 0x184   :  { %v283_v26 = vrot.slane %v244_v22, %v282_v23 }
 0x186   :  { %v250_v24 = vpop.xlane.xlu1 %249 }
 0x187   :  { %v247_v25 = vpop.xlane.xlu0 %246  ;;  %v291_v28 = vrot.slane %v250_v24, %v282_v23 }
 0x188   :  { %v287_v27 = vrot.slane %v247_v25, %v282_v23 }
 0x18a   :  { %v313_v29 = vsel %vm312_vm2, %v287_v27, %v283_v26  ;;  %v253_v30 = vpop.xlane.xlu1 %252  ;;  %v37_v27 = vld [vmem:[%s726_s2 + $0x18] sm:$0xff] }
 0x18b   :  { %v315_v31 = vsel %vm314_vm3, %v291_v28, %v313_v29  ;;  %v295_v32 = vrot.slane %v253_v30, %v282_v23  ;;  %v256_v33 = vpop.xlane.xlu0 %255 }
 0x18c   :  { %v299_v12 = vrot.slane %v256_v33, %v282_v23 }
 0x18d   :  { %v317_v34 = vsel %vm316_vm4, %v295_v32, %v315_v31 }
 0x18e   :  { %v259_v35 = vpop.xlane.xlu1 %258  ;;  %v319_v36 = vsel %vm318_vm5, %v299_v12, %v317_v34 }
 0x18f   :  { %v303_v37 = vrot.slane %v259_v35, %v282_v23  ;;  %v262_v38 = vpop.xlane.xlu0 %261  ;;  %v38_v35 = vld [vmem:[%s726_s2 + $0x20] sm:$0xff] }
 0x190   :  { %v307_v39 = vrot.slane %v262_v38, %v282_v23 }
 0x191   :  { %v321_v40 = vsel %vm320_vm6, %v303_v37, %v319_v36 }
 0x192   :  { %v265_v41 = vpop.xlane.xlu1 %264  ;;  %v323_v43 = vsel %vm322_vm7, %v307_v39, %v321_v40 }
 0x193   :  { %v311_v42 = vrot.slane %v265_v41, %v282_v23 }
 0x195   :  { %v325_v45 = vsel %vm324_vm8, %v311_v42, %v323_v43 }
 0x197   :  { %v270_v44 = vpop.permute.xlu0 %269 }
 0x198   :  { %vm271_vm10 = vcmp.lt.s32.totalorder %v267_v21, %v270_v44 }
 0x199   :  { %v327_v46 = vsel %vm271_vm10, %v325_v45, -inf  ;;  %v39_v45 = vld [vmem:[%s726_s2 + $0x28] sm:$0xff] }
 0x19a   :  { %v329_v47 = vsel %vm328_vm9, %v327_v46, -inf }
 0x19b   :  { %330 = vmax.xlane.f32.xlu1 %v329_v47 }
 0x228   :  { %v331_v48 = vpop.xlane.xlu1 %330 }
 0x229   :  { %v332_v49 = vsub.f32 %v327_v46, %v331_v48 }
 0x22b   :  { %v333_v50 = vmul.f32 1.442695, %v332_v49 }
 0x22d   :  { %536 = vpow2.f32 %v333_v50 }
 0x237   :  { %v537_v51 = vpop.eup %536 }
 0x238   :  { %v335_v52 = vsel %vm328_vm9, %v537_v51, 0.0 }
 0x239   :  { %336 = vadd.xlane.f32.xlu1 %v335_v52 }
 0x2c6   :  { %v337_v53 = vpop.xlane.xlu1 %336 }
 0x2c7   :  { %538 = vrcp.f32 %v337_v53 }
 0x2d1   :  { %v539_v54 = vpop.eup %538 }
 0x2d2   :  { %v339_v55 = vmul.f32 %v539_v54, %v337_v53 }
 0x2d4   :  { %v340_v56 = vsub.f32 2.0, %v339_v55 }
 0x2d6   :  { %v341_v57 = vmul.f32 %v539_v54, %v340_v56 }
 0x2d8   :  { %v342_v59 = vmul.f32 %v537_v51, %v341_v57  ;;  %v41_v57 = vld [vmem:[%s726_s2 + $0x38] sm:$0xff] }
 0x2da   :  { %481 = vst.msk [vmem:[%s725_s7] sm:$0xff] %vm328_vm9, %v342_v59  ;;  %v388_v60 = vrot.slane %v342_v59, %v387_v58  ;;  %v346_v61 = vrot.slane %v342_v59, %v606_v20  ;;  %v353_v63 = vrot.slane %v342_v59, %v352_v62  ;;  %v360_v1 = vrot.slane %v342_v59, %v359_v0 }
 0x2db   :  { %v367_v3 = vrot.slane %v342_v59, %v366_v2  ;;  %v374_v5 = vrot.slane %v342_v59, %v373_v4  ;;  %v381_v20 = vrot.slane %v342_v59, %v380_v6  ;;  %v395_v8 = vrot.slane %v342_v59, %v394_v7 }
 0x2dc   :  { %390 = vbcast.lane.b32.xlu0 %v388_v60, 256  ;;  %348 = vbcast.lane.b32.xlu1 %v346_v61, 256 }
 0x2e0   :  { %355 = vbcast.lane.b32.xlu1 %v353_v63, 256 }
 0x2e4   :  { %362 = vbcast.lane.b32.xlu1 %v360_v1, 256 }
 0x2e8   :  { %369 = vbcast.lane.b32.xlu1 %v367_v3, 256 }
 0x2ec   :  { %376 = vbcast.lane.b32.xlu1 %v374_v5, 256 }
 0x2f0   :  { %383 = vbcast.lane.b32.xlu1 %v381_v20, 256 }
 0x2f4   :  { %397 = vbcast.lane.b32.xlu1 %v395_v8, 256 }
 0x34e   :  { %v349_v10 = vpop.permute.xlu1 %348  ;;  %v391_v18 = vpop.permute.xlu0 %390 }
 0x34f   :  { %v399_v13 = vmul.f32 %v349_v10, %v34_v9  ;;  %v405_v25 = vmul.f32 %v391_v18, %v40_v17 }
 0x351   :  { %v408_v19 = vsel %vm407_vm11, %v399_v13, 0.0  ;;  %v450_v33 = vsel %vm407_vm11, %v405_v25, 0.0 }
 0x352   :  { %v356_v15 = vpop.permute.xlu1 %355  ;;  %v409_v26 = vrot.slane %v408_v19, 4  ;;  %v451_v40 = vrot.slane %v450_v33, 4 }
 0x353   :  { %v400_v16 = vmul.f32 %v356_v15, %v35_v11 }
 0x354   :  { %v410_v12 = vadd.f32 %v409_v26, %v408_v19  ;;  %v452_v51 = vadd.f32 %v451_v40, %v450_v33 }
 0x355   :  { %v415_v21 = vsel %vm407_vm11, %v400_v16, 0.0 }
 0x356   :  { %v416_v22 = vrot.slane %v415_v21, 4  ;;  %v363_v23 = vpop.permute.xlu1 %362  ;;  %v411_v43 = vrot.slane %v410_v12, 2  ;;  %v453_v63 = vrot.slane %v452_v51, 2 }
 0x357   :  { %v401_v24 = vmul.f32 %v363_v23, %v36_v14 }
 0x358   :  { %v417_v29 = vadd.f32 %v416_v22, %v415_v21  ;;  %v412_v54 = vadd.f32 %v411_v43, %v410_v12  ;;  %v454_v10 = vadd.f32 %v453_v63, %v452_v51 }
 0x359   :  { %v422_v28 = vsel %vm407_vm11, %v401_v24, 0.0 }
 0x35a   :  { %v423_v30 = vrot.slane %v422_v28, 4  ;;  %v370_v31 = vpop.permute.xlu1 %369  ;;  %v418_v37 = vrot.slane %v417_v29, 2  ;;  %v413_v2 = vrot.slane %v412_v54, 1  ;;  %v455_v22 = vrot.slane %v454_v10, 1 }
 0x35b   :  { %v402_v32 = vmul.f32 %v370_v31, %v37_v27 }
 0x35c   :  { %v424_v34 = vadd.f32 %v423_v30, %v422_v28  ;;  %v419_v47 = vadd.f32 %v418_v37, %v417_v29  ;;  %v414_v13 = vadd.f32 %v413_v2, %v412_v54  ;;  %v456_v30 = vadd.f32 %v455_v22, %v454_v10 }
 0x35d   :  { %v429_v36 = vsel %vm407_vm11, %v402_v32, 0.0 }
 0x35e   :  { %v430_v38 = vrot.slane %v429_v36, 4  ;;  %v377_v39 = vpop.permute.xlu1 %376  ;;  %v425_v41 = vrot.slane %v424_v34, 2  ;;  %v420_v59 = vrot.slane %v419_v47, 1 }
 0x35f   :  { %v403_v42 = vmul.f32 %v377_v39, %v38_v35 }
 0x360   :  { %v431_v44 = vadd.f32 %v430_v38, %v429_v36  ;;  %v426_v52 = vadd.f32 %v425_v41, %v424_v34  ;;  %v421_v20 = vadd.f32 %v420_v59, %v419_v47 }
 0x361   :  { %v436_v46 = vsel %vm407_vm11, %v403_v42, 0.0 }
 0x362   :  { %v432_v48 = vrot.slane %v431_v44, 2  ;;  %v437_v49 = vrot.slane %v436_v46, 4  ;;  %v384_v50 = vpop.permute.xlu1 %383  ;;  %v427_v0 = vrot.slane %v426_v52, 1  ;;  %v472_v18 = vsel %vm312_vm2, %v421_v20, %v414_v13 }
 0x363   :  { %v404_v53 = vmul.f32 %v384_v50, %v39_v45 }
 0x364   :  { %v433_v55 = vadd.f32 %v432_v48, %v431_v44  ;;  %v438_v56 = vadd.f32 %v437_v49, %v436_v46  ;;  %v428_v11 = vadd.f32 %v427_v0, %v426_v52 }
 0x365   :  { %v443_v58 = vsel %vm407_vm11, %v404_v53, 0.0 }
 0x366   :  { %v439_v60 = vrot.slane %v438_v56, 2  ;;  %v444_v61 = vrot.slane %v443_v58, 4  ;;  %v398_v62 = vpop.permute.xlu1 %397  ;;  %v434_v3 = vrot.slane %v433_v55, 1  ;;  %v473_v23 = vsel %vm314_vm3, %v428_v11, %v472_v18 }
 0x367   :  { %v406_v1 = vmul.f32 %v398_v62, %v41_v57 }
 0x368   :  { %v440_v4 = vadd.f32 %v439_v60, %v438_v56  ;;  %v445_v5 = vadd.f32 %v444_v61, %v443_v58  ;;  %v435_v15 = vadd.f32 %v434_v3, %v433_v55 }
 0x369   :  { %v457_v6 = vsel %vm407_vm11, %v406_v1, 0.0 }
 0x36a   :  { %v441_v7 = vrot.slane %v440_v4, 1  ;;  %v446_v8 = vrot.slane %v445_v5, 2  ;;  %v458_v9 = vrot.slane %v457_v6, 4  ;;  %v474_v24 = vsel %vm316_vm4, %v435_v15, %v473_v23 }
 0x36c   :  { %v447_v16 = vadd.f32 %v446_v8, %v445_v5  ;;  %v459_v14 = vadd.f32 %v458_v9, %v457_v6  ;;  %v442_v17 = vadd.f32 %v441_v7, %v440_v4 }
 0x36e   :  { %v448_v19 = vrot.slane %v447_v16, 1  ;;  %v460_v21 = vrot.slane %v459_v14, 2  ;;  %v475_v27 = vsel %vm318_vm5, %v442_v17, %v474_v24 }
 0x370   :  { %v449_v25 = vadd.f32 %v448_v19, %v447_v16  ;;  %v461_v26 = vadd.f32 %v460_v21, %v459_v14 }
 0x372   :  { %v476_v28 = vsel %vm320_vm6, %v449_v25, %v475_v27  ;;  %v462_v29 = vrot.slane %v461_v26, 1 }
 0x373   :  { %v477_v32 = vsel %vm322_vm7, %v456_v30, %v476_v28 }
 0x374   :  { %v463_v31 = vadd.f32 %v462_v29, %v461_v26 }
 0x376   :  { %v478_v33 = vsel %vm324_vm8, %v463_v31, %v477_v32 }
 0x377   :  { %480 = vst.msk [vmem:[%s727_s6] sm:$0xff] %vm407_vm11, %v478_v33 }

</bundles_post_ra>
